<compile_context>
chip_gen: v6e
topology: v6e:2x2x1
jax: 0.10.0
libtpu: 0.0.40
codegen_flags: <defaults>
</compile_context>

<pallas_src>
import functools

import jax
import jax.numpy as jnp
from jax import lax
from jax.experimental import pallas as pl
from jax.experimental.pallas import tpu as pltpu

LANES = 128
DEFAULT_TILE_ROWS = 1024  # (1024, 128) f32 block = 512 KiB


def _focal_loss_kernel(x_ref, t_ref, out_ref, *, alpha, gamma, rem, tile_elems):
    x = x_ref[...].astype(jnp.float32)
    t = t_ref[...].astype(jnp.float32)

    # Numerically stable BCE-with-logits (matches F.binary_cross_entropy_with_logits):
    #   bce = max(x, 0) - x*t + log1p(exp(-|x|))
    bce = jnp.maximum(x, 0.0) - x * t + jnp.log1p(jnp.exp(-jnp.abs(x)))

    # pt = exp(-bce); clamp as in the reference (upper bound 1-1e-8 ~ 1.0 in f32).
    pt = jnp.clip(jnp.exp(-bce), 1e-8, 1.0 - 1e-8)
    one_minus_pt = 1.0 - pt

    g = float(gamma)
    if g == 2.0:
        focal_w = one_minus_pt * one_minus_pt          # one VPU mul, no transcendentals
    elif g.is_integer() and g >= 0.0:
        focal_w = lax.integer_pow(one_minus_pt, int(g))
    else:
        focal_w = one_minus_pt ** g                    # non-integer gamma: true pow

    f_loss = focal_w * bce
    if float(alpha) != 1.0:
        f_loss = jnp.float32(alpha) * f_loss

    if rem == tile_elems:
        # Every tile (including the last) is fully valid: no mask at all.
        out_ref[...] = jnp.sum(f_loss, axis=0, keepdims=True)
    else:
        i = pl.program_id(0)
        last = pl.num_programs(0) - 1

        @pl.when(i != last)
        def _():
            out_ref[...] = jnp.sum(f_loss, axis=0, keepdims=True)

        @pl.when(i == last)
        def _():
            # Tile-local flat index (< tile_elems), so no int32 overflow risk.
            rows = lax.broadcasted_iota(jnp.int32, f_loss.shape, 0)
            cols = lax.broadcasted_iota(jnp.int32, f_loss.shape, 1)
            local_idx = rows * LANES + cols
            masked = jnp.where(local_idx < rem, f_loss, 0.0)
            out_ref[...] = jnp.sum(masked, axis=0, keepdims=True)


def focal_loss(inputs, targets, *, alpha=1.0, gamma=2.0, reduction='mean'):
    """Pallas TPU focal loss. inputs/targets: matching shape (e.g. NCHW logits)."""
    assert inputs.shape == targets.shape
    n_valid = int(inputs.size)

    x = inputs.reshape(-1)
    t = targets.reshape(-1)
    if not jnp.issubdtype(t.dtype, jnp.floating):
        t = t.astype(jnp.float32)

    # Pad only to a multiple of 128 (needed for the (M, 128) reshape).  The
    # ragged tail tile is masked in-kernel; no pad-to-tile-multiple copy.
    n_pad = (-n_valid) % LANES
    if n_pad:
        x = jnp.pad(x, (0, n_pad))
        t = jnp.pad(t, (0, n_pad))
    m_rows = x.size // LANES
    x2 = x.reshape(m_rows, LANES)
    t2 = t.reshape(m_rows, LANES)

    # Block rows: large (good pipelining), multiple of 8, no larger than needed.
    tile_rows = min(DEFAULT_TILE_ROWS, ((m_rows + 7) // 8) * 8)
    n_tiles = -(-m_rows // tile_rows)
    tile_elems = tile_rows * LANES
    rem = n_valid - (n_tiles - 1) * tile_elems  # valid elements in the last tile

    kernel = functools.partial(
        _focal_loss_kernel,
        alpha=float(alpha),
        gamma=float(gamma),
        rem=int(rem),
        tile_elems=int(tile_elems),
    )

    partials = pl.pallas_call(
        kernel,
        out_shape=jax.ShapeDtypeStruct((n_tiles, LANES), jnp.float32),
        grid=(n_tiles,),
        in_specs=[
            pl.BlockSpec((tile_rows, LANES), lambda i: (i, 0)),
            pl.BlockSpec((tile_rows, LANES), lambda i: (i, 0)),
        ],
        out_specs=pl.BlockSpec((1, LANES), lambda i: (i, 0)),
        compiler_params=pltpu.CompilerParams(
            dimension_semantics=("parallel",),  # independent tiles -> megacore on v7x
        ),
    )(x2, t2)

    total = jnp.sum(partials)
    if reduction == 'mean':
        return total / jnp.float32(n_valid)
    return total


def focal_loss_ref(inputs, targets, *, alpha=1.0, gamma=2.0, reduction='mean'):
    """Pure-JAX reference mirroring the PyTorch module."""
    x = inputs.astype(jnp.float32)
    t = targets.astype(jnp.float32)
    bce = jnp.maximum(x, 0.0) - x * t + jnp.log1p(jnp.exp(-jnp.abs(x)))
    pt = jnp.clip(jnp.exp(-bce), 1e-8, 1 - 1e-8)
    f_loss = alpha * (1.0 - pt) ** gamma * bce
    return jnp.mean(f_loss) if reduction == 'mean' else jnp.sum(f_loss)


if __name__ == "__main__":
    key = jax.random.PRNGKey(0)
    k1, k2, k3, k4 = jax.random.split(key, 4)

    # Small NCHW logits + binary targets, as a U-Net segmentation head would emit.
    B, C, H, W = 2, 4, 16, 16
    logits = jax.random.normal(k1, (B, C, H, W), dtype=jnp.float32) * 2.0
    targets = (jax.random.uniform(k2, (B, C, H, W)) > 0.5).astype(jnp.float32)

    loss = focal_loss(logits, targets, alpha=1.0, gamma=2.0, reduction='mean')
    loss = jax.block_until_ready(loss)
    ref = focal_loss_ref(logits, targets, alpha=1.0, gamma=2.0, reduction='mean')
    assert jnp.allclose(loss, ref, rtol=1e-5, atol=1e-6), (loss, ref)

    # Ragged shape (not a multiple of 128) exercises the masked tail-tile path.
    logits2 = jax.random.normal(k3, (3, 3, 7, 11), dtype=jnp.float32)
    targets2 = (jax.random.uniform(k4, (3, 3, 7, 11)) > 0.5).astype(jnp.float32)
    loss2 = focal_loss(logits2, targets2, alpha=0.25, gamma=2.0, reduction='sum')
    loss2 = jax.block_until_ready(loss2)
    ref2 = focal_loss_ref(logits2, targets2, alpha=0.25, gamma=2.0, reduction='sum')
    assert jnp.allclose(loss2, ref2, rtol=1e-5, atol=1e-6), (loss2, ref2)

    print("KERNEL_OK")
</pallas_src>

<mosaic_0001>
module attributes {stable_mosaic.version = 11 : i64} {
  func.func @_focal_loss_kernel(%arg0: i32, %arg1: memref<16x128xf32, #tpu.memory_space<vmem>>, %arg2: memref<16x128xf32, #tpu.memory_space<vmem>>, %arg3: memref<1x128xf32, #tpu.memory_space<vmem>>) attributes {dimension_semantics = [#tpu.dimension_semantics<parallel>], iteration_bounds = array<i64: 1>, scalar_prefetch = 0 : i64, scratch_operands = 0 : i64, tpu.core_type = #tpu.core_type<tc>, window_params = [{transform_indices = @transform_0, window_bounds = array<i64: 16, 128>}, {transform_indices = @transform_1, window_bounds = array<i64: 16, 128>}, {transform_indices = @transform_2, window_bounds = array<i64: 1, 128>}]} {
    %c0 = arith.constant 0 : index
    %c0_0 = arith.constant 0 : index
    %0 = vector.load %arg1[%c0, %c0_0] : memref<16x128xf32, #tpu.memory_space<vmem>>, vector<16x128xf32>
    %c0_1 = arith.constant 0 : index
    %c0_2 = arith.constant 0 : index
    %1 = vector.load %arg2[%c0_1, %c0_2] : memref<16x128xf32, #tpu.memory_space<vmem>>, vector<16x128xf32>
    %cst = arith.constant 0.000000e+00 : f32
    %2 = vector.broadcast %cst : f32 to vector<16x128xf32>
    %3 = arith.maximumf %0, %2 : vector<16x128xf32>
    %4 = arith.mulf %0, %1 : vector<16x128xf32>
    %5 = arith.subf %3, %4 : vector<16x128xf32>
    %6 = math.absf %0 : vector<16x128xf32>
    %cst_3 = arith.constant 0.000000e+00 : f32
    %7 = vector.broadcast %cst_3 : f32 to vector<16x128xf32>
    %8 = arith.subf %7, %6 : vector<16x128xf32>
    %9 = math.exp %8 : vector<16x128xf32>
    %10 = math.log1p %9 : vector<16x128xf32>
    %11 = arith.addf %5, %10 : vector<16x128xf32>
    %cst_4 = arith.constant 0.000000e+00 : f32
    %12 = vector.broadcast %cst_4 : f32 to vector<16x128xf32>
    %13 = arith.subf %12, %11 : vector<16x128xf32>
    %14 = math.exp %13 : vector<16x128xf32>
    %cst_5 = arith.constant 9.99999993E-9 : f32
    %cst_6 = arith.constant 1.000000e+00 : f32
    %15 = vector.broadcast %cst_5 : f32 to vector<16x128xf32>
    %16 = arith.maximumf %15, %14 : vector<16x128xf32>
    %17 = vector.broadcast %cst_6 : f32 to vector<16x128xf32>
    %18 = arith.minimumf %17, %16 : vector<16x128xf32>
    %cst_7 = arith.constant 1.000000e+00 : f32
    %19 = vector.broadcast %cst_7 : f32 to vector<16x128xf32>
    %20 = arith.subf %19, %18 : vector<16x128xf32>
    %21 = arith.mulf %20, %20 : vector<16x128xf32>
    %22 = arith.mulf %21, %11 : vector<16x128xf32>
    %cst_8 = arith.constant dense<0.000000e+00> : vector<128xf32>
    %23 = vector.multi_reduction <add>, %22, %cst_8 [0] : vector<16x128xf32> to vector<128xf32>
    %24 = vector.shape_cast %23 : vector<128xf32> to vector<1x128xf32>
    %c0_9 = arith.constant 0 : index
    %c0_10 = arith.constant 0 : index
    %25 = vector.load %arg3[%c0_9, %c0_10] : memref<1x128xf32, #tpu.memory_space<vmem>>, vector<1x128xf32>
    tpu.vector_store %arg3[%c0_9, %c0_10], %24 {strides = array<i32>} : memref<1x128xf32, #tpu.memory_space<vmem>>, vector<1x128xf32>,
    return
  }
  func.func @transform_0(%arg0: i32) -> (i32, i32) {
    %c0_i32 = arith.constant 0 : i32
    %c0_i32_0 = arith.constant 0 : i32
    return %arg0, %c0_i32 : i32, i32
  }
  func.func @transform_1(%arg0: i32) -> (i32, i32) {
    %c0_i32 = arith.constant 0 : i32
    %c0_i32_0 = arith.constant 0 : i32
    return %arg0, %c0_i32 : i32, i32
  }
  func.func @transform_2(%arg0: i32) -> (i32, i32) {
    %c0_i32 = arith.constant 0 : i32
    %c0_i32_0 = arith.constant 0 : i32
    return %arg0, %c0_i32 : i32, i32
  }
}

</mosaic_0001>

<bundles_post_ra>
// kernel: tpu_custom_call.1
= control target key start
LH: loop header
LB: loop body
LE: loop exit
PB: predicated region body
PF: predicated region fallthrough
CT: control target
= control target key end

     0   :  { %7 = vsyncpa [#allocation3], 0  ;;  %s230_s0 = inlined_call_operand.hbm [shape: f32[16,128], index: 0, kind: input, shape index: {}]   ;;  %s231_s1 = inlined_call_operand.hbm [shape: f32[16,128], index: 1, kind: input, shape index: {}]   ;;  %s232_s2 = inlined_call_operand.hbm [shape: f32[1,128], index: 2, kind: output, shape index: {}]  }
   0x1   :  { %8 = vsyncpa [#allocation6], 0 }
   0x2   :  { %9 = vsyncpa [#allocation4], 0  ;;  %s201_s9 = smov [#allocation2]  }
   0x3   :  { %s15_s10 = sshll.u32 %s201_s9, 4  ;;  %s16_s10 = int_to_ptr.vmem [resolvable:$true] %s15_s10 }
   0x4   :  { %s143_s11 = scalar_lea.vmem %s16_s10, 256  ;;  %p148_p1 = scmp.lt.s32.totalorder %s16_s10, %s16_s10 }
   0x5   :  { %p144_p0 = scmp.ne.s32.totalorder %s16_s10, %s143_s11  ;;  %p149_p2 = scmp.lt.s32.totalorder %s143_s11, %s143_s11 }
   0x7   :  { %p150_p3 = por %p149_p2, %p148_p1 }
   0x9   :  { %p151_p4 = pnand %p150_p3, %p144_p0 }
   0xb   :  { %154 = shalt.err (!%p151_p4)
}
   0xc   :  { %s202_s12 = smov 128   ;;  %s203_s13 = smov 8  }
   0xd   :  { %21 = dma.hbm_to_vmem [thread:$0]  %s230_s0, 256, %s16_s10, [#allocation3], %s202_s12, %s202_s12, %s203_s13  }
   0xe   :  { %s204_s16 = smov [#allocation5]  }
   0xf   :  { %s27_s17 = sshll.u32 %s204_s16, 4  ;;  %s28_s17 = int_to_ptr.vmem [resolvable:$true] %s27_s17 }
  0x10   :  { %s163_s18 = scalar_lea.vmem %s28_s17, 256  ;;  %p168_p6 = scmp.lt.s32.totalorder %s28_s17, %s28_s17 }
  0x11   :  { %p164_p5 = scmp.ne.s32.totalorder %s28_s17, %s163_s18  ;;  %p169_p7 = scmp.lt.s32.totalorder %s163_s18, %s163_s18 }
  0x13   :  { %p170_p8 = por %p169_p7, %p168_p6 }
  0x15   :  { %p171_p9 = pnand %p170_p8, %p164_p5 }
  0x17   :  { %174 = shalt.err (!%p171_p9)
}
  0x18   :  { %33 = dma.hbm_to_vmem [thread:$0]  %s231_s1, 256, %s28_s17, [#allocation6], %s202_s12, %s202_s12, %s203_s13  }
  0x19   :  { %195 = dma.done.wait [#allocation3], 256  }
  0x1a   :  { %196 = vsyncadd [#allocation3], 4294967040 }
  0x1b   :  { %197 = dma.done.wait [#allocation6], 256  }
  0x1c   :  { %198 = vsyncadd [#allocation6], 4294967040  ;;  %v40_v0 = vld [vmem:[#allocation2] sm:$0xff]  ;;  %v41_v1 = vld [vmem:[#allocation2 + $0x8] sm:$0xff]  ;;  %s205_s0 = smov [#allocation7]  }
  0x1d   :  { %v50_v2 = vand.u32 2147483647, %v40_v0  ;;  %v51_v3 = vand.u32 2147483647, %v41_v1  ;;  %v42_v14 = vld [vmem:[#allocation5] sm:$0xff]  ;;  %v43_v15 = vld [vmem:[#allocation5 + $0x8] sm:$0xff] }
  0x1e   :  { %v44_v17 = vmax.f32 %v40_v0, 0.0  ;;  %v46_v18 = vmul.f32 %v42_v14, %v40_v0  ;;  %v45_v21 = vmax.f32 %v41_v1, 0.0  ;;  %v47_v22 = vmul.f32 %v43_v15, %v41_v1  ;;  %s108_s1 = sshll.u32 %s205_s0, 4  ;;  %s109_s1 = int_to_ptr.vmem [resolvable:$true] %s108_s1 }
  0x1f   :  { %v52_v4 = vsub.f32 0.0, %v50_v2  ;;  %v53_v5 = vsub.f32 0.0, %v51_v3  ;;  %s175_s21 = scalar_lea.vmem %s109_s1, 16  ;;  %s179_s22 = scalar_lea.vmem %s109_s1, 32 }
  0x20   :  { %v48_v26 = vsub.f32 %v44_v17, %v46_v18  ;;  %v49_v29 = vsub.f32 %v45_v21, %v47_v22  ;;  %p176_p10 = scmp.ne.s32.totalorder %s109_s1, %s175_s21  ;;  %p180_p11 = scmp.lt.s32.totalorder %s109_s1, %s109_s1 }
  0x21   :  { %v54_v6 = vmul.f32 1.442695, %v52_v4  ;;  %v56_v7 = vmul.f32 1.442695, %v53_v5  ;;  %p181_p12 = scmp.lt.s32.totalorder %s179_s22, %s175_s21 }
  0x23   :  { %123 = vpow2.f32 %v54_v6  ;;  %p182_p13 = por %p181_p12, %p180_p11 }
  0x24   :  { %125 = vpow2.f32 %v56_v7 }
  0x25   :  { %p183_p0 = pnand %p182_p13, %p176_p10 }
  0x30   :  { %v124_v8 = vpop.eup %123 }
  0x31   :  { %v126_v9 = vpop.eup %125  ;;  %v58_v10 = vadd.f32 1.0, %v124_v8  ;;  %v61_v12 = vmul.f32 -0.5, %v124_v8  ;;  %v64_v19 = vand.u32 2147483647, %v124_v8 }
  0x32   :  { %v67_v11 = vadd.f32 1.0, %v126_v9  ;;  %v70_v13 = vmul.f32 -0.5, %v126_v9  ;;  %v73_v23 = vand.u32 2147483647, %v126_v9 }
  0x33   :  { %127 = vlog2.f32 %v58_v10  ;;  %v62_v16 = vadd.f32 1.0, %v61_v12  ;;  %vm65_vm0 = vcmp.lt.f32.partialorder %v64_v19, 0.0004427343 }
  0x34   :  { %129 = vlog2.f32 %v67_v11  ;;  %v71_v20 = vadd.f32 1.0, %v70_v13  ;;  %vm74_vm1 = vcmp.lt.f32.partialorder %v73_v23, 0.0004427343 }
  0x35   :  { %v63_v24 = vmul.f32 %v124_v8, %v62_v16 }
  0x36   :  { %v72_v27 = vmul.f32 %v126_v9, %v71_v20 }
  0x40   :  { %v128_v25 = vpop.eup %127 }
  0x41   :  { %v130_v28 = vpop.eup %129  ;;  %v60_v30 = vmul.f32 0.6931472, %v128_v25 }
  0x42   :  { %v69_v31 = vmul.f32 0.6931472, %v130_v28 }
  0x43   :  { %v66_v32 = vsel %vm65_vm0, %v63_v24, %v60_v30 }
  0x44   :  { %v75_v33 = vsel %vm74_vm1, %v72_v27, %v69_v31  ;;  %v76_v34 = vadd.f32 %v66_v32, %v48_v26 }
  0x45   :  { %v77_v35 = vadd.f32 %v75_v33, %v49_v29 }
  0x46   :  { %v78_v36 = vsub.f32 0.0, %v76_v34 }
  0x47   :  { %v79_v37 = vsub.f32 0.0, %v77_v35 }
  0x48   :  { %v80_v38 = vmul.f32 1.442695, %v78_v36 }
  0x49   :  { %v82_v39 = vmul.f32 1.442695, %v79_v37 }
  0x4a   :  { %131 = vpow2.f32 %v80_v38 }
  0x4b   :  { %133 = vpow2.f32 %v82_v39 }
  0x57   :  { %v132_v40 = vpop.eup %131 }
  0x58   :  { %v134_v41 = vpop.eup %133  ;;  %v84_v42 = vmax.f32 %v132_v40, 1e-08 }
  0x59   :  { %v85_v43 = vmax.f32 %v134_v41, 1e-08 }
  0x5a   :  { %v86_v44 = vmin.f32 %v84_v42, 1.0 }
  0x5b   :  { %v87_v45 = vmin.f32 %v85_v43, 1.0 }
  0x5c   :  { %v88_v46 = vsub.f32 1.0, %v86_v44 }
  0x5d   :  { %v89_v47 = vsub.f32 1.0, %v87_v45 }
  0x5e   :  { %v90_v48 = vmul.f32 %v88_v46, %v88_v46 }
  0x5f   :  { %v91_v49 = vmul.f32 %v89_v47, %v89_v47 }
  0x60   :  { %v92_v50 = vmul.f32 %v90_v48, %v76_v34 }
  0x61   :  { %v93_v51 = vmul.f32 %v91_v49, %v77_v35 }
  0x63   :  { %v94_v52 = vadd.f32 %v93_v51, %v92_v50 }
  0x65   :  { %v95_v53 = vrot.slane %v94_v52, 4 }
  0x67   :  { %v96_v54 = vadd.f32 %v95_v53, %v94_v52 }
  0x69   :  { %v97_v55 = vrot.slane %v96_v54, 2 }
  0x6b   :  { %v98_v56 = vadd.f32 %v97_v55, %v96_v54 }
  0x6d   :  { %v99_v57 = vrot.slane %v98_v56, 1 }
  0x6f   :  { %v100_v58 = vadd.f32 %v99_v57, %v98_v56 }
  0x71   :  { %101 = vst [vmem:[#allocation7] sm:$0x1] %v100_v58 }
  0x72   :  { %186 = shalt.err (!%p183_p0)
}
  0x73   :  { %111 = dma.vmem_to_hbm [thread:$0]  %s109_s1, 16, %s232_s2, [#allocation4]  }
  0x74   :  { %199 = dma.done.wait [#allocation4], 16  }
  0x75   :  { %200 = vsyncadd [#allocation4], 4294967280 }
  0x76   :  { %115 = vsyncpa [#allocation3], 1 }
  0x77   :  { %116 = vsyncpa [#allocation6], 1 }
  0x78   :  { %117 = vsyncpa [#allocation4], 1 }

</bundles_post_ra>
